<compile_context>
chip_gen: v7x
topology: tpu7x:2x2x1
jax: 0.10.0
libtpu: 0.0.40
codegen_flags: <defaults>
</compile_context>

<pallas_src>
import jax
import jax.numpy as jnp
from jax.experimental import pallas as pl
from jax.experimental.pallas import tpu as pltpu


def _round_up(a: int, m: int) -> int:
    return -(-a // m) * m


def _choose_lane_tile(bc: int, hw: int, itemsizes, target_block_bytes: int) -> int:
    """Lane tile along the flattened H*W axis.

    The budget is counted in bytes per input block AFTER sublane padding
    (rows round up to 8/16/32 per dtype) and never below the f32 footprint of
    the kernel's intermediates, so enlarging tiles cannot silently overshoot
    the scoped VMEM limit.
    """
    worst_row_bytes = max(
        [_round_up(bc, 32 // max(1, isz)) * isz for isz in itemsizes]
        + [_round_up(bc, 8) * 4]  # f32 intermediates inside the kernel body
    )
    tile = max(128, (target_block_bytes // worst_row_bytes) // 128 * 128)
    if tile >= hw:
        return hw  # single tail-free block; full-extent lane dim is always legal
    return tile


def _make_dice_partials_kernel(threshold: float, hw: int, lane_tile: int):
    """Per-(batch*class)-row partial sums: intersection and pred+target denom."""

    def kernel(x_ref, t_ref, inter_ref, denom_ref):
        k = pl.program_id(1)

        @pl.when(k == 0)
        def _init():
            inter_ref[...] = jnp.zeros_like(inter_ref)
            denom_ref[...] = jnp.zeros_like(denom_ref)

        # Global element offset of this block along the flattened H*W axis.
        # Uses the UNCLAMPED logical position, so padded grid steps (whose DMA
        # the index_map clamps onto the last real block) are fully masked out.
        start = (pl.program_id(0) * pl.num_programs(1) + k) * lane_tile
        lane = jax.lax.broadcasted_iota(jnp.int32, (1, lane_tile), 1)
        valid = (lane + start) < hw                      # (1, T) bool tail mask

        x = x_ref[...]                                   # (BC, T) native dtype
        t = t_ref[...]                                   # (BC, T) native dtype

        pred = x > jnp.asarray(threshold, x.dtype)       # bool (BC, T)
        one = jnp.float32(1.0)
        zero = jnp.float32(0.0)

        # Gate EVERY accumulation with the tail mask (OOB lanes hold garbage).
        pred_f = jnp.where(jnp.logical_and(valid, pred), one, zero)   # f32
        targ_f = jnp.where(valid, t.astype(jnp.float32), zero)        # f32
        # pred[pred == targ].sum() == count(pred==1 & targ==1).  Exact even for
        # soft targets (do NOT replace with sum(pred * targ)).
        hit_f = jnp.where(t == jnp.asarray(1, t.dtype), pred_f, zero)

        inter_ref[...] += jnp.sum(hit_f, axis=-1, keepdims=True)
        denom_ref[...] += jnp.sum(pred_f + targ_f, axis=-1, keepdims=True)

    return kernel


def new_loss(logits, targets, *, new: bool = False, single_loss: str = "dice",
             target_block_bytes: int = 4 << 20):
    """Pallas TPU implementation of NewLoss.forward (default dice path).

    logits, targets: (B, C, H, W) arrays (NCHW, like the PyTorch module).
    Targets may be float, bf16, bool or integer masks; they are streamed in
    their native dtype (supplying uint8/bool masks upstream halves that
    stream's HBM traffic — do not insert a wrapper-side cast).
    """
    if new or single_loss != "dice":
        # TODO(synk): AvgHausdorffLoss branches (cdist + row/col min) not ported.
        raise NotImplementedError("Only the default dice path is implemented.")

    B, C, H, W = logits.shape
    assert targets.shape == logits.shape
    BC, HW = B * C, H * W

    # Free, contiguous reshapes; NO padding, NO dtype change, NO transpose.
    x = logits.reshape(BC, HW)
    t = targets.reshape(BC, HW)

    itemsizes = (jnp.dtype(x.dtype).itemsize, jnp.dtype(t.dtype).itemsize)
    tile = _choose_lane_tile(BC, HW, itemsizes, target_block_bytes)
    n_blocks = pl.cdiv(HW, tile)

    # Split the H*W reduction into 2 independent partial-sum ranges so both
    # v7x TensorCores get work even when B*C row-blocks alone give no
    # parallelism; on single-TC chips the extra axis is a near-free serial loop.
    n_splits = 2 if n_blocks >= 2 else 1
    k_per = pl.cdiv(n_blocks, n_splits)

    def in_index(s, k):
        # Clamp padded grid steps onto the last real block; the kernel masks
        # their whole contribution, so only that one DMA is redundant.
        return (0, jnp.minimum(s * k_per + k, n_blocks - 1))

    kernel = _make_dice_partials_kernel(0.5, HW, tile)

    inter_p, denom_p = pl.pallas_call(
        kernel,
        out_shape=(
            jax.ShapeDtypeStruct((n_splits, BC, 1), jnp.float32),
            jax.ShapeDtypeStruct((n_splits, BC, 1), jnp.float32),
        ),
        grid_spec=pltpu.PrefetchScalarGridSpec(
            num_scalar_prefetch=0,
            grid=(n_splits, k_per),
            in_specs=[
                # TODO(synk): sweep pipeline_mode=pl.Buffered(3) here only if an
                # xprof trace still shows exposed DMA between grid steps.
                pl.BlockSpec((BC, tile), in_index),
                pl.BlockSpec((BC, tile), in_index),
            ],
            out_specs=(
                pl.BlockSpec((pl.Squeezed(), BC, 1), lambda s, k: (s, 0, 0)),
                pl.BlockSpec((pl.Squeezed(), BC, 1), lambda s, k: (s, 0, 0)),
            ),
        ),
        compiler_params=pltpu.CompilerParams(
            dimension_semantics=("parallel", "arbitrary"),
            # Below every generation's physical VMEM (64 MiB/TC on v7x,
            # 128 MiB on v5e/v6e); headroom for the 2x2 pipeline buffers plus
            # any unfused f32 intermediates.
            vmem_limit_bytes=48 * 1024 * 1024,
        ),
    )(x, t)

    # Tiny nonlinear dice epilogue on the combined partial sums (stays in XLA).
    inter = jnp.sum(inter_p, axis=0)[:, 0]               # (BC,)
    denom = jnp.sum(denom_p, axis=0)[:, 0]               # (BC,)
    smooth = jnp.float32(1.0)
    dice = (smooth + inter * 2.0) / (denom + smooth)
    loss = jnp.sum(1.0 - dice)
    # Match the reference's "loss / batch * class_" evaluation order.
    return loss / B * C


def _reference_new_loss(logits, targets):
    """Pure-JAX reference mirroring NewLoss (new=False, single_loss='dice')."""
    B, C, H, W = logits.shape
    pred = (logits > 0.5).astype(jnp.float32)
    smooth = jnp.float32(1.0)
    total = jnp.float32(0.0)
    for i in range(B):
        for j in range(C):
            ch = pred[i, j]
            targ = jnp.asarray(targets[i, j], jnp.float32)
            inter = jnp.sum(jnp.where(ch == targ, ch, 0.0))
            dice = (smooth + inter * 2.0) / (jnp.sum(ch) + jnp.sum(targ) + smooth)
            total = total + (1.0 - dice)
    return total / B * C


if __name__ == "__main__":
    key = jax.random.PRNGKey(0)
    ks = jax.random.split(key, 8)

    def check(logits, targets, **kw):
        out = jax.block_until_ready(new_loss(logits, targets, **kw))
        ref = _reference_new_loss(logits, targets)
        assert abs(float(out) - float(ref)) < 1e-3, (
            float(out), float(ref), tuple(logits.shape), str(logits.dtype))

    B, C, H, W = 2, 4, 16, 16

    # 1) Basic f32 case (single lane block).
    logits = jax.random.uniform(ks[0], (B, C, H, W), dtype=jnp.float32)
    targets = (jax.random.uniform(ks[1], (B, C, H, W)) > 0.5).astype(jnp.float32)
    check(logits, targets)

    # 2) bf16 logits streamed in native dtype.
    logits_bf16 = jax.random.uniform(ks[2], (B, C, H, W), dtype=jnp.bfloat16)
    check(logits_bf16, targets)

    # 3) Non-128-multiple spatial size + tiny block budget: exercises the
    #    in-kernel tail mask and the 2-way reduction split.
    lg = jax.random.uniform(ks[3], (B, C, 10, 25), dtype=jnp.float32)      # HW=250
    tg = (jax.random.uniform(ks[4], (B, C, 10, 25)) > 0.5).astype(jnp.float32)
    check(lg, tg, target_block_bytes=4096)

    # 4) Odd block count with 2 splits: exercises the clamped, fully-masked
    #    padded grid step.
    lg = jax.random.uniform(ks[5], (B, C, 16, 24), dtype=jnp.float32)      # HW=384
    tg = (jax.random.uniform(ks[6], (B, C, 16, 24)) > 0.5).astype(jnp.float32)
    check(lg, tg, target_block_bytes=4096)

    # 5) batch=1 (B*C < 8): full-extent sublane block path.
    lg = jax.random.uniform(ks[7], (1, C, H, W), dtype=jnp.float32)
    tg = (jax.random.uniform(ks[0], (1, C, H, W)) > 0.5).astype(jnp.float32)
    check(lg, tg)

    print("KERNEL_OK")
</pallas_src>

<mosaic_0001>
module attributes {stable_mosaic.version = 11 : i64} {
  func.func @kernel(%arg0: i32, %arg1: i32, %arg2: memref<8x256xf32, #tpu.memory_space<vmem>>, %arg3: memref<8x256xf32, #tpu.memory_space<vmem>>, %arg4: memref<1x8x1xf32, #tpu.memory_space<vmem>>, %arg5: memref<1x8x1xf32, #tpu.memory_space<vmem>>) attributes {dimension_semantics = [#tpu.dimension_semantics<parallel>, #tpu.dimension_semantics<arbitrary>], iteration_bounds = array<i64: 1, 1>, scalar_prefetch = 0 : i64, scratch_operands = 0 : i64, tpu.core_type = #tpu.core_type<tc>, window_params = [{transform_indices = @transform_0, window_bounds = array<i64: 8, 256>}, {transform_indices = @transform_1, window_bounds = array<i64: 8, 256>}, {transform_indices = @transform_2, window_bounds = array<i64: 1, 8, 1>}, {transform_indices = @transform_3, window_bounds = array<i64: 1, 8, 1>}]} {
    %c0_i32 = arith.constant 0 : i32
    %0 = arith.cmpi eq, %arg1, %c0_i32 : i32
    %1 = arith.extui %0 : i1 to i32
    %c0_i32_0 = arith.constant 0 : i32
    %2 = arith.cmpi ne, %1, %c0_i32_0 : i32
    scf.if %2 {
      %cst_24 = arith.constant 0.000000e+00 : f32
      %45 = vector.broadcast %cst_24 : f32 to vector<8x1xf32>
      %c0_25 = arith.constant 0 : index
      %c0_26 = arith.constant 0 : index
      %c0_27 = arith.constant 0 : index
      %46 = vector.load %arg4[%c0_25, %c0_26, %c0_27] : memref<1x8x1xf32, #tpu.memory_space<vmem>>, vector<1x8x1xf32>
      %47 = vector.shape_cast %46 : vector<1x8x1xf32> to vector<8x1xf32>
      %48 = vector.shape_cast %45 : vector<8x1xf32> to vector<1x8x1xf32>
      tpu.vector_store %arg4[%c0_25, %c0_26, %c0_27], %48 {strides = array<i32>} : memref<1x8x1xf32, #tpu.memory_space<vmem>>, vector<1x8x1xf32>,
      %cst_28 = arith.constant 0.000000e+00 : f32
      %49 = vector.broadcast %cst_28 : f32 to vector<8x1xf32>
      %c0_29 = arith.constant 0 : index
      %c0_30 = arith.constant 0 : index
      %c0_31 = arith.constant 0 : index
      %50 = vector.load %arg5[%c0_29, %c0_30, %c0_31] : memref<1x8x1xf32, #tpu.memory_space<vmem>>, vector<1x8x1xf32>
      %51 = vector.shape_cast %50 : vector<1x8x1xf32> to vector<8x1xf32>
      %52 = vector.shape_cast %49 : vector<8x1xf32> to vector<1x8x1xf32>
      tpu.vector_store %arg5[%c0_29, %c0_30, %c0_31], %52 {strides = array<i32>} : memref<1x8x1xf32, #tpu.memory_space<vmem>>, vector<1x8x1xf32>,
    } else {
    }
    %c1_i32 = arith.constant 1 : i32
    %3 = arith.muli %arg0, %c1_i32 : i32
    %4 = arith.addi %3, %arg1 : i32
    %c256_i32 = arith.constant 256 : i32
    %5 = arith.muli %4, %c256_i32 : i32
    %6 = tpu.iota {dimensions = array<i32: 1>} : vector<1x256xi32>
    %7 = vector.broadcast %5 : i32 to vector<1x256xi32>
    %8 = arith.addi %6, %7 : vector<1x256xi32>
    %c256_i32_1 = arith.constant 256 : i32
    %9 = vector.broadcast %c256_i32_1 : i32 to vector<1x256xi32>
    %10 = arith.cmpi slt, %8, %9 : vector<1x256xi32>
    %c0 = arith.constant 0 : index
    %c0_2 = arith.constant 0 : index
    %11 = vector.load %arg2[%c0, %c0_2] : memref<8x256xf32, #tpu.memory_space<vmem>>, vector<8x256xf32>
    %c0_3 = arith.constant 0 : index
    %c0_4 = arith.constant 0 : index
    %12 = vector.load %arg3[%c0_3, %c0_4] : memref<8x256xf32, #tpu.memory_space<vmem>>, vector<8x256xf32>
    %cst = arith.constant 5.000000e-01 : f32
    %13 = vector.broadcast %cst : f32 to vector<8x256xf32>
    %14 = arith.cmpf ogt, %11, %13 : vector<8x256xf32>
    %15 = vector.broadcast %10 : vector<1x256xi1> to vector<8x256xi1>
    %16 = arith.andi %15, %14 : vector<8x256xi1>
    %cst_5 = arith.constant 1.000000e+00 : f32
    %cst_6 = arith.constant 0.000000e+00 : f32
    %17 = vector.broadcast %cst_5 : f32 to vector<8x256xf32>
    %18 = vector.broadcast %cst_6 : f32 to vector<8x256xf32>
    %19 = arith.select %16, %17, %18 : vector<8x256xi1>, vector<8x256xf32>
    %cst_7 = arith.constant 0.000000e+00 : f32
    %20 = vector.shape_cast %10 : vector<1x256xi1> to vector<1x256xi1>
    %21 = vector.broadcast %20 : vector<1x256xi1> to vector<8x256xi1>
    %22 = vector.broadcast %cst_7 : f32 to vector<8x256xf32>
    %23 = arith.select %21, %12, %22 : vector<8x256xi1>, vector<8x256xf32>
    %cst_8 = arith.constant 1.000000e+00 : f32
    %24 = vector.broadcast %cst_8 : f32 to vector<8x256xf32>
    %25 = arith.cmpf oeq, %12, %24 : vector<8x256xf32>
    %cst_9 = arith.constant 0.000000e+00 : f32
    %26 = vector.broadcast %cst_9 : f32 to vector<8x256xf32>
    %27 = arith.select %25, %19, %26 : vector<8x256xi1>, vector<8x256xf32>
    %c0_10 = arith.constant 0 : index
    %c0_11 = arith.constant 0 : index
    %c0_12 = arith.constant 0 : index
    %28 = vector.load %arg4[%c0_10, %c0_11, %c0_12] : memref<1x8x1xf32, #tpu.memory_space<vmem>>, vector<1x8x1xf32>
    %29 = vector.shape_cast %28 : vector<1x8x1xf32> to vector<8x1xf32>
    %cst_13 = arith.constant dense<0.000000e+00> : vector<8xf32>
    %30 = vector.multi_reduction <add>, %27, %cst_13 [1] : vector<8x256xf32> to vector<8xf32>
    %31 = vector.shape_cast %30 : vector<8xf32> to vector<8x1xf32>
    %32 = arith.addf %29, %31 : vector<8x1xf32>
    %c0_14 = arith.constant 0 : index
    %c0_15 = arith.constant 0 : index
    %c0_16 = arith.constant 0 : index
    %33 = vector.load %arg4[%c0_14, %c0_15, %c0_16] : memref<1x8x1xf32, #tpu.memory_space<vmem>>, vector<1x8x1xf32>
    %34 = vector.shape_cast %33 : vector<1x8x1xf32> to vector<8x1xf32>
    %35 = vector.shape_cast %32 : vector<8x1xf32> to vector<1x8x1xf32>
    tpu.vector_store %arg4[%c0_14, %c0_15, %c0_16], %35 {strides = array<i32>} : memref<1x8x1xf32, #tpu.memory_space<vmem>>, vector<1x8x1xf32>,
    %c0_17 = arith.constant 0 : index
    %c0_18 = arith.constant 0 : index
    %c0_19 = arith.constant 0 : index
    %36 = vector.load %arg5[%c0_17, %c0_18, %c0_19] : memref<1x8x1xf32, #tpu.memory_space<vmem>>, vector<1x8x1xf32>
    %37 = vector.shape_cast %36 : vector<1x8x1xf32> to vector<8x1xf32>
    %38 = arith.addf %19, %23 : vector<8x256xf32>
    %cst_20 = arith.constant dense<0.000000e+00> : vector<8xf32>
    %39 = vector.multi_reduction <add>, %38, %cst_20 [1] : vector<8x256xf32> to vector<8xf32>
    %40 = vector.shape_cast %39 : vector<8xf32> to vector<8x1xf32>
    %41 = arith.addf %37, %40 : vector<8x1xf32>
    %c0_21 = arith.constant 0 : index
    %c0_22 = arith.constant 0 : index
    %c0_23 = arith.constant 0 : index
    %42 = vector.load %arg5[%c0_21, %c0_22, %c0_23] : memref<1x8x1xf32, #tpu.memory_space<vmem>>, vector<1x8x1xf32>
    %43 = vector.shape_cast %42 : vector<1x8x1xf32> to vector<8x1xf32>
    %44 = vector.shape_cast %41 : vector<8x1xf32> to vector<1x8x1xf32>
    tpu.vector_store %arg5[%c0_21, %c0_22, %c0_23], %44 {strides = array<i32>} : memref<1x8x1xf32, #tpu.memory_space<vmem>>, vector<1x8x1xf32>,
    return
  }
  func.func @transform_0(%arg0: i32, %arg1: i32) -> (i32, i32) {
    %c1_i32 = arith.constant 1 : i32
    %0 = arith.muli %arg0, %c1_i32 : i32
    %1 = arith.addi %0, %arg1 : i32
    %c0_i32 = arith.constant 0 : i32
    %2 = arith.minsi %1, %c0_i32 : i32
    %c0_i32_0 = arith.constant 0 : i32
    %c0_i32_1 = arith.constant 0 : i32
    return %c0_i32_0, %2 : i32, i32
  }
  func.func @transform_1(%arg0: i32, %arg1: i32) -> (i32, i32) {
    %c1_i32 = arith.constant 1 : i32
    %0 = arith.muli %arg0, %c1_i32 : i32
    %1 = arith.addi %0, %arg1 : i32
    %c0_i32 = arith.constant 0 : i32
    %2 = arith.minsi %1, %c0_i32 : i32
    %c0_i32_0 = arith.constant 0 : i32
    %c0_i32_1 = arith.constant 0 : i32
    return %c0_i32_0, %2 : i32, i32
  }
  func.func @transform_2(%arg0: i32, %arg1: i32) -> (i32, i32, i32) {
    %c0_i32 = arith.constant 0 : i32
    %c0_i32_0 = arith.constant 0 : i32
    %c0_i32_1 = arith.constant 0 : i32
    return %arg0, %c0_i32, %c0_i32_0 : i32, i32, i32
  }
  func.func @transform_3(%arg0: i32, %arg1: i32) -> (i32, i32, i32) {
    %c0_i32 = arith.constant 0 : i32
    %c0_i32_0 = arith.constant 0 : i32
    %c0_i32_1 = arith.constant 0 : i32
    return %arg0, %c0_i32, %c0_i32_0 : i32, i32, i32
  }
}

</mosaic_0001>

<bundles_post_ra>
// kernel: tpu_custom_call.1
= control target key start
LH: loop header
LB: loop body
LE: loop exit
PB: predicated region body
PF: predicated region fallthrough
CT: control target
= control target key end

     0   :  { %9 = vsyncpa [#allocation3], 0  ;;  %s243_s0 = inlined_call_operand.hbm [shape: f32[8,256], index: 0, kind: input, shape index: {}]   ;;  %s244_s1 = inlined_call_operand.hbm [shape: f32[8,256], index: 1, kind: input, shape index: {}]   ;;  %s245_s2 = inlined_call_operand.vmem [shape: f32[1,8,1], index: 2, kind: output, shape index: {0}]   ;;  %s246_s3 = inlined_call_operand.vmem [shape: f32[1,8,1], index: 3, kind: output, shape index: {1}]  }
   0x1   :  { %10 = vsyncpa [#allocation5], 0  ;;  %s174_s12 = smov [#allocation2]   ;;  %s175_s14 = smov [#allocation4]  }
   0x2   :  { %s23_s13 = sshll.u32 %s174_s12, 4  ;;  %s39_s15 = sshll.u32 %s175_s14, 4  ;;  %s24_s13 = int_to_ptr.vmem [resolvable:$true] %s23_s13  ;;  %s40_s15 = int_to_ptr.vmem [resolvable:$true] %s39_s15 }
   0x3   :  { %s126_s18 = scalar_lea.hbm %s243_s0, 256 }
   0x4   :  { %p127_p0 = scmp.ne.s32.totalorder %s243_s0, %s126_s18  ;;  %p130_p1 = scmp.lt.u32.totalorder %s126_s18, %s243_s0 }
   0x6   :  { %p132_p2 = pnand %p130_p1, %p127_p0 }
   0x8   :  { %135 = shalt.err (!%p132_p2)
}
   0x9   :  { %s136_s23 = scalar_lea.vmem %s24_s13, 256  ;;  %p141_p4 = scmp.lt.s32.totalorder %s24_s13, %s24_s13 }
   0xa   :  { %p137_p3 = scmp.ne.s32.totalorder %s24_s13, %s136_s23  ;;  %p142_p5 = scmp.lt.s32.totalorder %s136_s23, %s136_s23 }
   0xc   :  { %p143_p6 = por %p142_p5, %p141_p4 }
   0xe   :  { %p144_p7 = pnand %p143_p6, %p137_p3 }
  0x10   :  { %147 = shalt.err (!%p144_p7)
}
  0x11   :  { %26 = dma.hbm_to_vmem [thread:$0]  %s243_s0, 256, %s24_s13, [#allocation3]  }
  0x12   :  { %s148_s28 = scalar_lea.hbm %s244_s1, 256 }
  0x13   :  { %p149_p8 = scmp.ne.s32.totalorder %s244_s1, %s148_s28  ;;  %p152_p9 = scmp.lt.u32.totalorder %s148_s28, %s244_s1 }
  0x15   :  { %p154_p10 = pnand %p152_p9, %p149_p8 }
  0x17   :  { %157 = shalt.err (!%p154_p10)
}
  0x18   :  { %s158_s6 = scalar_lea.vmem %s40_s15, 256  ;;  %p163_p12 = scmp.lt.s32.totalorder %s40_s15, %s40_s15 }
  0x19   :  { %p159_p11 = scmp.ne.s32.totalorder %s40_s15, %s158_s6  ;;  %p164_p13 = scmp.lt.s32.totalorder %s158_s6, %s158_s6 }
  0x1b   :  { %p165_p0 = por %p164_p13, %p163_p12 }
  0x1d   :  { %p166_p1 = pnand %p165_p0, %p159_p11 }
  0x1f   :  { %169 = shalt.err (!%p166_p1)
}
  0x20   :  { %42 = dma.hbm_to_vmem [thread:$0]  %s244_s1, 256, %s40_s15, [#allocation5]  }
  0x21   :  { %170 = dma.done.wait [#allocation3], 256  }
  0x22   :  { %171 = vsyncadd [#allocation3], 4294967040 }
  0x23   :  { %172 = dma.done.wait [#allocation5], 256  }
  0x24   :  { %173 = vsyncadd [#allocation5], 4294967040  ;;  %vm61_vm0 = vcmask 7168   ;;  %v176_v0 = vmov 0.0   ;;  %v74_v1 = vld [vmem:[#allocation2] sm:$0xff]  ;;  %v75_v2 = vld [vmem:[#allocation2 + $0x8] sm:$0xff] }
  0x25   :  { %62 = vst.msk [vmem:[%s245_s2] sm:$0xff] %vm61_vm0, %v176_v0  ;;  %63 = vst.msk [vmem:[%s246_s3] sm:$0xff] %vm61_vm0, %v176_v0  ;;  %v76_v3 = vld [vmem:[#allocation4] sm:$0xff]  ;;  %v77_v4 = vld [vmem:[#allocation4 + $0x8] sm:$0xff]  ;;  %vm78_vm1 = vcmp.gt.f32.partialorder %v74_v1, 0.5  ;;  %vm79_vm2 = vcmp.gt.f32.partialorder %v75_v2, 0.5 }
  0x26   :  { %vm90_vm3 = vcmp.eq.f32.partialorder %v76_v3, 1.0  ;;  %v86_v5 = vsel %vm78_vm1, 1.0, %v176_v0  ;;  %v87_v6 = vsel %vm79_vm2, 1.0, %v176_v0  ;;  %vm91_vm4 = vcmp.eq.f32.partialorder %v77_v4, 1.0 }
  0x27   :  { %v92_v7 = vsel %vm90_vm3, %v86_v5, 0.0  ;;  %v93_v8 = vsel %vm91_vm4, %v87_v6, 0.0  ;;  %v102_v9 = vadd.f32 %v86_v5, %v76_v3  ;;  %v103_v10 = vadd.f32 %v87_v6, %v77_v4 }
  0x28   :  { %v95_v11 = vadd.f32 %v93_v8, %v92_v7 }
  0x29   :  { %v104_v12 = vadd.f32 %v103_v10, %v102_v9 }
  0x2a   :  { %96 = vadd.xlane.f32.xlu0 %v95_v11 }
  0x2c   :  { %v94_v13 = vld [vmem:[%s245_s2] sm:$0xff] }
  0x2d   :  { %v101_v16 = vld [vmem:[%s246_s3] sm:$0xff] }
  0x2e   :  { %105 = vadd.xlane.f32.xlu0 %v104_v12 }
  0xb7   :  { %v97_v14 = vpop.xlane.xlu0 %96 }
  0xb8   :  { %v98_v15 = vadd.f32 %v97_v14, %v94_v13 }
  0xba   :  { %100 = vst.msk [vmem:[%s245_s2] sm:$0xff] %vm61_vm0, %v98_v15 }
  0xbb   :  { %v106_v17 = vpop.xlane.xlu0 %105 }
  0xbc   :  { %v107_v18 = vadd.f32 %v106_v17, %v101_v16 }
  0xbe   :  { %108 = vst.msk [vmem:[%s246_s3] sm:$0xff] %vm61_vm0, %v107_v18 }
  0xbf   :  { %117 = vsyncpa [#allocation3], 1 }
  0xc0   :  { %118 = vsyncpa [#allocation5], 1 }

</bundles_post_ra>
